<compile_context>
chip_gen: v6e
topology: v6e:2x2x1
jax: 0.10.0
libtpu: 0.0.40
codegen_flags: <defaults>
</compile_context>

<pallas_src>
import jax
import jax.numpy as jnp
from jax.experimental import pallas as pl
from jax.experimental.pallas import tpu as pltpu


# ----------------------------------------------------------------------------
# Small helpers
# ----------------------------------------------------------------------------
def _round_up(x: int, m: int) -> int:
    return ((x + m - 1) // m) * m


def _sublane_multiple(itemsize: int) -> int:
    # minimum legal sublane tile per element width (f32: 8, bf16: 16, int8/fp8: 32)
    return {4: 8, 2: 16, 1: 32}.get(itemsize, 8)


# ----------------------------------------------------------------------------
# Buffer setup (plain JAX) — deterministic, mirrors the PyTorch __init__.
# ----------------------------------------------------------------------------
def build_rope_tables(d_model: int, max_length: int = 10000):
    pos = jnp.arange(max_length, dtype=jnp.float32)[:, None]            # (L, 1)
    i = jnp.arange(d_model // 2, dtype=jnp.float32)[None, :]            # (1, d/2)
    # theta = pos * 10000 ** (-2 * (i - 1) / d_model)   (note (i - 1), as in the module)
    theta = pos * jnp.power(10000.0, -2.0 * (i - 1.0) / float(d_model))  # (L, d/2)
    cos = jnp.cos(theta)
    cos_pe = jnp.repeat(cos, 2, axis=-1)[None, :, :]                     # (1, L, d)
    # Faithful to the PyTorch quirk: register_buffer('sin_pe', cos_pe)
    sin_pe = cos_pe
    return cos_pe, sin_pe


def fold_cos_table(cos_pe):
    """One-time (init-time) fold of the cos table into the kernel's lane-dense layout.

    * E % 128 == 0  ->  (rows, E)   positions along rows (E already lane-dense)
    * otherwise     ->  (rows, 128) flat fold of (max_length, E); pairs (2i, 2i+1) never
                        straddle a 128 boundary (E and 128 both even) and flat parity
                        equals lane parity, so the in-kernel rotate stays exact.
    Row counts are padded (with zeros) to a multiple of 32 so any dtype's minimum sublane
    tile is legal without per-call slicing.
    """
    table = cos_pe[0].astype(jnp.float32)             # (max_length, E)
    max_length, E = table.shape
    if E % 128 == 0:
        rows = _round_up(max_length, 32)
        if rows != max_length:
            table = jnp.pad(table, ((0, rows - max_length), (0, 0)))
        return table                                   # (rows, E)
    flat = table.reshape(-1)                           # (max_length * E,)
    rows = _round_up(pl.cdiv(flat.shape[0], 128), 32)
    pad = rows * 128 - flat.shape[0]
    if pad:
        flat = jnp.pad(flat, (0, pad))
    return flat.reshape(rows, 128)                     # (rows, 128)


# ----------------------------------------------------------------------------
# Pallas kernel: out = cos * (x + rotate(x))      (sin table == cos table)
#   rotate(x)[..., 2i]   = -x[..., 2i+1]
#   rotate(x)[..., 2i+1] =  x[..., 2i]
# Implemented with XLU lane rolls + a lane-parity select (no reshapes in-kernel).
# Math in f32 (VPU is idle — kernel is HBM-bound), output cast back to x dtype.
# ----------------------------------------------------------------------------
def rope_kernel(x_ref, cos_ref, o_ref):
    x = x_ref[...].astype(jnp.float32)               # (1, tR, L)
    L = x.shape[-1]
    # Parity mask as a (1, 1, L) row; broadcasts over sublanes in the select.
    lane = jax.lax.broadcasted_iota(jnp.int32, (1, 1, L), dimension=2)
    is_even = (lane & 1) == 0
    # Circular rolls; wrap-around lanes (0 and L-1) are never selected because L is even.
    x_next = pltpu.roll(x, shift=L - 1, axis=2)      # x_next[j] = x[j + 1]
    x_prev = pltpu.roll(x, shift=1, axis=2)          # x_prev[j] = x[j - 1]
    x_rot = jnp.where(is_even, -x_next, x_prev)
    o_ref[...] = (cos_ref[...] * (x + x_rot)).astype(o_ref.dtype)


# ----------------------------------------------------------------------------
# Row-tile chooser: ~4 MiB per x buffer, capped so the double-buffered footprint
# (x + out in x dtype, cos in f32, x2 buffers) stays <= ~40 MiB (safe on v7x 64 MiB VMEM).
# ----------------------------------------------------------------------------
def _choose_row_tile(rows: int, lane_width: int, itemsize: int,
                     target_bytes: int = 4 << 20,
                     max_block_bytes: int = 8 << 20,
                     max_footprint_bytes: int = 40 << 20) -> int:
    sub = _sublane_multiple(itemsize)
    if rows <= sub:
        return rows
    bytes_per_row_foot = 2 * lane_width * (2 * itemsize + 4)   # double-buffered, all streams
    t = min(target_bytes // (lane_width * itemsize),
            max_block_bytes // (lane_width * itemsize),
            max_footprint_bytes // bytes_per_row_foot,
            rows)
    t = max(sub, (int(t) // sub) * sub)
    return min(t, rows)                                         # tail block handled by cdiv grid


# ----------------------------------------------------------------------------
# Wrapper: layout folding, tiling, pallas_call.
# ----------------------------------------------------------------------------
def rotary_positional_embeddings(x, cos_folded):
    """out = x * cos_pe[:, :T] + rotate(x) * sin_pe[:, :T], with sin_pe == cos_pe.

    `cos_folded` must come from fold_cos_table (pre-folded once at init; f32).
    """
    B, T, E = x.shape
    assert E % 2 == 0, "d_model must be even"
    itemsize = jnp.dtype(x.dtype).itemsize
    sub = _sublane_multiple(itemsize)

    if E % 128 == 0:
        # Already lane-dense; just make the row (position) count sublane-legal.
        L = E
        assert cos_folded.shape[1] == E, "cos table folded for a different d_model"
        rows = _round_up(max(T, sub), sub)
        x_k = x if rows == T else jnp.pad(x, ((0, 0), (0, rows - T), (0, 0)))
        padded = rows != T
    else:
        # Lane-dense flat fold: (T, E) positions folded into a 128-wide last dim.
        L = 128
        assert cos_folded.shape[1] == 128, "cos table folded for a different d_model"
        flat_len = T * E
        rows = _round_up(pl.cdiv(flat_len, 128), sub)
        x_flat = x.reshape(B, flat_len)
        pad = rows * 128 - flat_len
        if pad:
            x_flat = jnp.pad(x_flat, ((0, 0), (0, pad)))
        x_k = x_flat.reshape(B, rows, L)
        padded = pad != 0

    t_rows = _choose_row_tile(rows, L, itemsize)
    n_row_tiles = pl.cdiv(rows, t_rows)

    # v7x has 2 TensorCores: make sure the (parallel) grid exposes >= 2 steps when possible.
    if n_row_tiles * B < 2 and rows >= 2 * sub:
        t_rows = max(sub, (rows // 2 // sub) * sub)
        n_row_tiles = pl.cdiv(rows, t_rows)

    # Explicit VMEM budget: x + out (x dtype) + cos (f32), each double-buffered, + slack.
    footprint = 2 * t_rows * L * (2 * itemsize + 4)
    vmem_limit = int(min(48 << 20, max(16 << 20, 2 * footprint)))

    out = pl.pallas_call(
        rope_kernel,
        out_shape=jax.ShapeDtypeStruct((B, rows, L), x.dtype),
        # B innermost: cos block index is constant across consecutive steps -> no re-DMA.
        grid=(n_row_tiles, B),
        in_specs=[
            pl.BlockSpec((1, t_rows, L), lambda t, b: (b, t, 0)),   # x
            pl.BlockSpec((t_rows, L), lambda t, b: (t, 0)),         # cos (broadcast over batch)
        ],
        out_specs=pl.BlockSpec((1, t_rows, L), lambda t, b: (b, t, 0)),
        compiler_params=pltpu.CompilerParams(
            dimension_semantics=("parallel", "parallel"),
            vmem_limit_bytes=vmem_limit,
        ),
    )(x_k, cos_folded)

    if E % 128 == 0:
        return out[:, :T, :] if padded else out
    out_flat = out.reshape(B, rows * 128)
    if padded:
        out_flat = out_flat[:, :T * E]
    return out_flat.reshape(B, T, E)
    # TODO(synk): if callers can donate x, add input_output_aliases={0: 0} at the jit boundary
    # to drop the separate output allocation (shapes/dtypes already match).


# ----------------------------------------------------------------------------
# Pure-JAX reference (mirrors the PyTorch forward exactly) for verification.
# NOTE: the kernel hard-codes the module's sin_pe == cos_pe quirk; if the module is ever
# "fixed" to use a real sin table, this kernel must be updated too.
# ----------------------------------------------------------------------------
def rope_reference(x, cos_pe, sin_pe):
    B, T, E = x.shape
    x_even = x[..., 0::2]
    x_odd = x[..., 1::2]
    x_rot = jnp.stack([-x_odd, x_even], axis=-1).reshape(B, T, E)
    return x * cos_pe[:, :T, :] + x_rot * sin_pe[:, :T, :]


if __name__ == "__main__":
    d_model = 32
    max_length = 64
    B, T = 2, 8

    cos_pe, sin_pe = build_rope_tables(d_model, max_length)
    cos_folded = fold_cos_table(cos_pe)       # one-time, init-side fold (no per-call slice/cast)

    key = jax.random.PRNGKey(0)
    x = jax.random.normal(key, (B, T, d_model), dtype=jnp.float32)

    out = rotary_positional_embeddings(x, cos_folded)
    out = jax.block_until_ready(out)

    ref = rope_reference(x, cos_pe, sin_pe)
    assert out.shape == (B, T, d_model)
    assert jnp.allclose(out, ref, atol=1e-5, rtol=1e-5), "mismatch vs reference"

    print("KERNEL_OK")
</pallas_src>

<mosaic_0001>
module attributes {stable_mosaic.version = 11 : i64} {
  func.func @rope_kernel(%arg0: i32, %arg1: i32, %arg2: memref<1x8x128xf32, #tpu.memory_space<vmem>>, %arg3: memref<8x128xf32, #tpu.memory_space<vmem>>, %arg4: memref<1x8x128xf32, #tpu.memory_space<vmem>>) attributes {dimension_semantics = [#tpu.dimension_semantics<parallel>, #tpu.dimension_semantics<parallel>], iteration_bounds = array<i64: 1, 2>, scalar_prefetch = 0 : i64, scratch_operands = 0 : i64, tpu.core_type = #tpu.core_type<tc>, window_params = [{transform_indices = @transform_0, window_bounds = array<i64: 1, 8, 128>}, {transform_indices = @transform_1, window_bounds = array<i64: 8, 128>}, {transform_indices = @transform_2, window_bounds = array<i64: 1, 8, 128>}]} {
    %c0 = arith.constant 0 : index
    %c0_0 = arith.constant 0 : index
    %c0_1 = arith.constant 0 : index
    %0 = vector.load %arg2[%c0, %c0_0, %c0_1] : memref<1x8x128xf32, #tpu.memory_space<vmem>>, vector<1x8x128xf32>
    %1 = tpu.iota {dimensions = array<i32: 2>} : vector<1x1x128xi32>
    %c1_i32 = arith.constant 1 : i32
    %2 = vector.broadcast %c1_i32 : i32 to vector<1x1x128xi32>
    %3 = arith.andi %1, %2 : vector<1x1x128xi32>
    %c0_i32 = arith.constant 0 : i32
    %4 = vector.broadcast %c0_i32 : i32 to vector<1x1x128xi32>
    %5 = arith.cmpi eq, %3, %4 : vector<1x1x128xi32>
    %c127_i32 = arith.constant 127 : i32
    %6 = tpu.dynamic_rotate %0 by %c127_i32 dim 2 : vector<1x8x128xf32>, i32 -> vector<1x8x128xf32>
    %c1_i32_2 = arith.constant 1 : i32
    %7 = tpu.dynamic_rotate %0 by %c1_i32_2 dim 2 : vector<1x8x128xf32>, i32 -> vector<1x8x128xf32>
    %cst = arith.constant 0.000000e+00 : f32
    %8 = vector.broadcast %cst : f32 to vector<1x8x128xf32>
    %9 = arith.subf %8, %6 : vector<1x8x128xf32>
    %10 = vector.shape_cast %5 : vector<1x1x128xi1> to vector<1x1x128xi1>
    %11 = vector.broadcast %10 : vector<1x1x128xi1> to vector<1x8x128xi1>
    %12 = arith.select %11, %9, %7 : vector<1x8x128xi1>, vector<1x8x128xf32>
    %c0_3 = arith.constant 0 : index
    %c0_4 = arith.constant 0 : index
    %13 = vector.load %arg3[%c0_3, %c0_4] : memref<8x128xf32, #tpu.memory_space<vmem>>, vector<8x128xf32>
    %14 = arith.addf %0, %12 : vector<1x8x128xf32>
    %15 = vector.shape_cast %13 : vector<8x128xf32> to vector<1x8x128xf32>
    %16 = arith.mulf %15, %14 : vector<1x8x128xf32>
    %c0_5 = arith.constant 0 : index
    %c0_6 = arith.constant 0 : index
    %c0_7 = arith.constant 0 : index
    %17 = vector.load %arg4[%c0_5, %c0_6, %c0_7] : memref<1x8x128xf32, #tpu.memory_space<vmem>>, vector<1x8x128xf32>
    tpu.vector_store %arg4[%c0_5, %c0_6, %c0_7], %16 {strides = array<i32>} : memref<1x8x128xf32, #tpu.memory_space<vmem>>, vector<1x8x128xf32>,
    return
  }
  func.func @transform_0(%arg0: i32, %arg1: i32) -> (i32, i32, i32) {
    %c0_i32 = arith.constant 0 : i32
    %c0_i32_0 = arith.constant 0 : i32
    return %arg1, %arg0, %c0_i32 : i32, i32, i32
  }
  func.func @transform_1(%arg0: i32, %arg1: i32) -> (i32, i32) {
    %c0_i32 = arith.constant 0 : i32
    %c0_i32_0 = arith.constant 0 : i32
    return %arg0, %c0_i32 : i32, i32
  }
  func.func @transform_2(%arg0: i32, %arg1: i32) -> (i32, i32, i32) {
    %c0_i32 = arith.constant 0 : i32
    %c0_i32_0 = arith.constant 0 : i32
    return %arg1, %arg0, %c0_i32 : i32, i32, i32
  }
}

</mosaic_0001>

<bundles_post_ra>
// kernel: tpu_custom_call.1
= control target key start
LH: loop header
LB: loop body
LE: loop exit
PB: predicated region body
PF: predicated region fallthrough
CT: control target
= control target key end

     0   :  { %7 = vsyncpa [#allocation3], 0  ;;  %s731_s0 = inlined_call_operand.hbm [shape: f32[2,8,128], index: 0, kind: input, shape index: {}]   ;;  %s732_s1 = inlined_call_operand.hbm [shape: f32[32,128], index: 1, kind: input, shape index: {}]   ;;  %s733_s2 = inlined_call_operand.hbm [shape: f32[2,8,128], index: 2, kind: output, shape index: {}]  }
   0x1   :  { %9 = vsyncpa [#allocation3 + $0x1], 0 }
   0x2   :  { %10 = vsyncpa [#allocation6], 0 }
   0x3   :  { %11 = vsyncpa [#allocation4], 0 }
   0x4   :  { %13 = vsyncpa [#allocation4 + $0x1], 0  ;;  %s570_s9 = smov 0   ;;  %s572_s10 = smov 0  }
   0x5   :  { %s574_s11 = smov 0   ;;  %s576_s12 = smov 0  }
   0x6   :  { %s578_s13 = smov 0   ;;  %s580_s14 = smov 0  }
   0x7 LB: > { %s320_s15 = sadd.s32 4294967295, %s548_s14   ;;  %s321_s16 = sadd.s32 4294967294, %s548_s14   ;;  %s548_s14 = sphi %s580_s14, %s19_s14   ;;  %s544_s13 = sphi %s578_s13, %s750_s13   ;;  %s540_s12 = sphi %s576_s12, %s749_s12   ;;  %s536_s11 = sphi %s574_s11, %s748_s11   ;;  %s532_s10 = sphi %s572_s10, %s747_s10   ;;  %s528_s9 = sphi %s570_s9, %s746_s9  }
   0x8   : > { %p53_p0 = scmp.ne.s32.totalorder %s532_s10, %s528_s9  ;;  %p604_p1 = scmp.eq.s32.totalorder %s320_s15, 0 }
   0x9   : > { %p608_p2 = scmp.eq.s32.totalorder %s320_s15, 1  ;;  %p111_p3 = scmp.eq.s32.totalorder %s321_s16, 1 }
   0xa   : > { %p614_p4 = por %p604_p1, %p53_p0  ;;  %p322_p5 = scmp.ge.s32.totalorder %s548_s14, 1 }
   0xb   : > { %p619_p6 = por %p111_p3, %p53_p0  ;;  %p118_p7 = scmp.lt.s32.totalorder %s548_s14, 3 }
   0xc   : > { %s737_s19 = scalar_select %p614_p4, 1, 0 }
   0xd   : > { %s738_s20 = scalar_select %p619_p6, 1, 0 }
   0xe   : > { %p624_p8 = pnand %p322_p5, %p118_p7  ;;  %s550_s22 = smov [#allocation5]  }
   0xf   : > { %s133_s23 = sshll.u32 %s550_s22, 4  ;;  %s28_s25 = sadd.s32 1, %s544_s13  ;;  %s134_s23 = int_to_ptr.vmem [resolvable:$true] %s133_s23 }
  0x10   : > { %p343_p10 = pneg %p624_p8  ;;  %s40_s26 = sadd.s32 1, %s536_s11 }
  0x11   : > { %p29_p12 = scmp.ge.s32.totalorder %s28_s25, 2  ;;  %s421_s27 = scalar_lea.vmem %s134_s23, 128 }
  0x12   : > { %p633_p11 = pnand %p343_p10, %p604_p1  ;;  %p422_p0 = scmp.ne.s32.totalorder %s134_s23, %s421_s27 }
  0x13   : > { %p429_p7 = scmp.lt.s32.totalorder %s134_s23, %s134_s23  ;;  %p430_p6 = scmp.lt.s32.totalorder %s421_s27, %s421_s27 }
  0x14   : > { %p412_p13 = pneg %p633_p11 }
  0x15   : > { %p431_p9 = por %p430_p6, %p429_p7 }
  0x16   : > { %p424_p3 = pnand %p422_p0, %p412_p13 }
  0x18   : > { %p425_p5 = pneg %p424_p3 }
  0x1a   : > { %p432_p4 = pnand %p431_p9, %p425_p5 }
  0x1c   : > { %435 = shalt.err (!%p432_p4)
}
  0x1d   : > { %346 = dma.hbm_to_vmem [thread:$0]  (!%p633_p11), %s732_s1, 128, %s134_s23, [#allocation6]  }
  0x1e   : > { %s752_s25 = smov (%p29_p12, %s28_s25), 0  ;;  %p47_p6 = scmp.ne.s32.totalorder %s536_s11, %s532_s10 }
  0x1f   : > { %p48_p4 = scmp.eq.s32.totalorder %s548_s14, 0  ;;  %s35_s30 = ssub.s32 %s544_s13, %s752_s25 }
  0x20   : > { %p356_p9 = scmp.lt.s32.totalorder %s548_s14, 2  ;;  %p38_p10 = scmp.eq.s32.totalorder %s35_s30, 0 }
  0x21   : > { %p49_p13 = por %p48_p4, %p47_p6  ;;  %p656_p0 = por %p608_p2, %p47_p6 }
  0x22   : > { %s144_s4 = sand.u32 1, %s536_s11   ;;  %s326_s7 = sshll.u32 %s544_s13, 7 }
  0x23   : > { %s662_s5 = scalar_select %p38_p10, %s536_s11, %s40_s26  }
  0x24   : > { %s325_s6 = sshll.u32 %s144_s4, 3  ;;  %s154_s16 = scalar_lea.hbm %s731_s0, %s326_s7 }
  0x25   : > { %s148_s22 = scalar_lea.vmem [#allocation2], %s325_s6  ;;  %p668_p11 = pnand %p356_p9, %p49_p13 }
  0x26   : > { %s156_s23 = sshll.u32 %s148_s22, 4  ;;  %s145_s18 = scalar_lea.sflag [#allocation3], %s144_s4  ;;  %s157_s23 = int_to_ptr.vmem [resolvable:$true] %s156_s23 }
  0x27   : > { %p438_p2 = pneg %p668_p11  ;;  %s449_s27 = scalar_lea.vmem %s157_s23, 128 }
  0x28   : > { %p450_p12 = scmp.ne.s32.totalorder %s157_s23, %s449_s27  ;;  %s551_s26 = smov [#allocation2]  }
  0x29   : > { %s454_s28 = sshll.u32 %s551_s26, 4  ;;  %s455_s28 = int_to_ptr.vmem [resolvable:$false] %s454_s28 }
  0x2a   : > { %p452_p3 = pnand %p450_p12, %p438_p2  ;;  %s456_s29 = scalar_lea.vmem %s455_s28, 256 }
  0x2b   : > { %p457_p7 = scmp.lt.s32.totalorder %s157_s23, %s455_s28  ;;  %p458_p6 = scmp.lt.s32.totalorder %s456_s29, %s449_s27 }
  0x2c   : > { %p453_p5 = pneg %p452_p3 }
  0x2d   : > { %p459_p4 = por %p458_p6, %p457_p7 }
  0x2f   : > { %p460_p10 = pnand %p459_p4, %p453_p5 }
  0x31   : > { %463 = shalt.err (!%p460_p10)
}
  0x32   : > { %350 = dma.hbm_to_vmem [thread:$0]  (!%p668_p11), %s154_s16, 128, %s157_s23, %s145_s18  }
  0x33   : > { %165 = sbr.rel (%p624_p8) target bundleno = 197 (0xc5), region = 28  ;;  %s679_s30 = sand.u32 (!%p624_p8), 1, %s532_s10  }
  0x34   : > { %s328_s4 = sshll.u32 (!%p624_p8), %s679_s30, 3  ;;  %s168_s6 = scalar_lea.sflag (!%p624_p8), [#allocation3], %s679_s30 }
  0x35   : > { %s171_s7 = scalar_lea.vmem (!%p624_p8), [#allocation2], %s328_s4  ;;  %p743_p9 = scmp.ne.s32.totalorder (!%p624_p8), %s737_s19, 0 }
  0x38   : > { %515 = dma.done.wait (%p743_p9), %s168_s6, 128  }
  0x39   : > { %517 = vsyncadd (%p743_p9), %s168_s6, 4294967168 }
  0x3a   : > { %519 = dma.done.wait (%p604_p1), [#allocation6], 128  }
  0x3b   : > { %521 = vsyncadd (%p604_p1), [#allocation6], 4294967168  ;;  %v196_v0 = vld [vmem:[%s171_s7] sm:$0xff]  ;;  %s552_s21 = smov 127   ;;  %s553_s8 = smov 1   ;;  %v197_v1 = vlaneseq  ;;  %v209_v7 = vld [vmem:[#allocation5] sm:$0xff] }
  0x3c   : > { %201 = vrot.lane.b32.xlu0 %v196_v0, %s552_s21  ;;  %s332_s19 = sshll.u32 %s540_s12, 7  ;;  %s195_s17 = scalar_lea.vmem [#allocation7], %s328_s4 }
  0x3d   : > { %v198_v2 = vand.u32 127, %v197_v1  ;;  %s228_s15 = sshll.u32 %s195_s17, 4  ;;  %s226_s23 = scalar_lea.hbm %s733_s2, %s332_s19  ;;  %s229_s15 = int_to_ptr.vmem [resolvable:$true] %s228_s15 }
  0x3e   : > { %s214_s24 = scalar_lea.sflag [#allocation4], %s679_s30  ;;  %s464_s18 = scalar_lea.vmem %s229_s15, 128 }
  0x3f   : > { %v199_v3 = vand.u32 1, %v198_v2  ;;  %p465_p1 = scmp.ne.s32.totalorder %s229_s15, %s464_s18  ;;  %s554_s27 = smov [#allocation7]  }
  0x40   : > { %203 = vrot.lane.b32.xlu0 %v196_v0, %s553_s8  ;;  %s468_s26 = sshll.u32 %s554_s27, 4  ;;  %s469_s26 = int_to_ptr.vmem [resolvable:$false] %s468_s26 }
  0x41   : > { %vm200_vm0 = vcmp.eq.s32.totalorder %v199_v3, 0  ;;  %p466_p8 = pnand %p465_p1, %p656_p0  ;;  %s470_s12 = scalar_lea.vmem %s469_s26, 256 }
  0x42   : > { %p471_p11 = scmp.lt.s32.totalorder %s229_s15, %s469_s26  ;;  %p472_p2 = scmp.lt.s32.totalorder %s470_s12, %s464_s18 }
  0x43   : > { %p467_p13 = pneg %p466_p8 }
  0x44   : > { %p473_p12 = por %p472_p2, %p471_p11 }
  0x46   : > { %p474_p3 = pnand %p473_p12, %p467_p13 }
  0xae   : > { %v202_v4 = vpop.permute.xlu0 %201 }
  0xaf   : > { %v205_v5 = vsub.f32 0.0, %v202_v4 }
  0xb2   : > { %v204_v6 = vpop.permute.xlu0 %203 }
  0xb3   : > { %v208_v8 = vsel %vm200_vm0, %v205_v5, %v204_v6 }
  0xb4   : > { %v210_v9 = vadd.f32 %v208_v8, %v196_v0 }
  0xb6   : > { %v211_v10 = vmul.f32 %v210_v9, %v209_v7 }
  0xb8   : > { %212 = vst [vmem:[%s195_s17] sm:$0xff] %v211_v10 }
  0xb9   : > { %477 = shalt.err (!%p474_p3)
}
  0xba   : > { %s478_s28 = scalar_lea.hbm %s226_s23, 128  ;;  %s482_s4 = scalar_lea.hbm %s733_s2, 256 }
  0xbb   : > { %p479_p5 = scmp.ne.s32.totalorder %s226_s23, %s478_s28  ;;  %p483_p4 = scmp.lt.s32.totalorder %s226_s23, %s733_s2 }
  0xbc   : > { %p484_p10 = scmp.lt.s32.totalorder %s482_s4, %s478_s28 }
  0xbd   : > { %p480_p7 = pnand %p479_p5, %p656_p0 }
  0xbe   : > { %p485_p9 = por %p484_p10, %p483_p4 }
  0xbf   : > { %p481_p6 = pneg %p480_p7 }
  0xc1   : > { %p486_p1 = pnand %p485_p9, %p481_p6 }
  0xc3   : > { %489 = shalt.err (!%p486_p1)
}
  0xc4   : > { %341 = dma.vmem_to_hbm [thread:$0]  (%p656_p0), %s229_s15, 128, %s226_s23, %s214_s24  }
  0xc5 PF: > { %s240_s21 = sand.u32 1, %s528_s9   ;;  %p744_p8 = scmp.ne.s32.totalorder %s738_s20, 0 }
  0xc6   : > { %p745_p13 = scmp.ge.s32.totalorder %s548_s14, 2  ;;  %s241_s8 = scalar_lea.sflag [#allocation4], %s240_s21 }
  0xc8   : > { %p352_p11 = pnand %p745_p13, %p744_p8 }
  0xca   : > { %p353_p2 = pneg %p352_p11 }
  0xcc   : > { %523 = dma.done.wait (%p353_p2), %s241_s8, 128  }
  0xcd   : > { %525 = vsyncadd (%p353_p2), %s241_s8, 4294967168  ;;  %s19_s14 = sadd.s32 1, %s548_s14   ;;  %s746_s9 = smov %s532_s10 }
  0xce   : > { %p16_p12 = scmp.ge.s32.totalorder %s19_s14, 4   ;;  %s747_s10 = smov %s536_s11 }
  0xcf   : > { %s748_s11 = smov %s662_s5  ;;  %s749_s12 = smov %s544_s13 }
  0xd0   : > { %s750_s13 = smov %s752_s25  ;;  %18 = sbr.rel (!%p16_p12) target bundleno = 7 (0x7), region = 78 }
  0xd5   :  { %246 = vsyncpa [#allocation3], 1 }
  0xd6   :  { %248 = vsyncpa [#allocation3 + $0x1], 1 }
  0xd7   :  { %249 = vsyncpa [#allocation6], 1 }
  0xd8   :  { %250 = vsyncpa [#allocation4], 1 }
  0xd9   :  { %252 = vsyncpa [#allocation4 + $0x1], 1 }

</bundles_post_ra>
